<compile_context>
chip_gen: v5e
topology: v5e:2x2
jax: 0.10.0
libtpu: 0.0.40
codegen_flags: <defaults>
</compile_context>

<pallas_src>
from functools import partial

import jax
import jax.numpy as jnp
from jax.experimental import pallas as pl
from jax.experimental.pallas import tpu as pltpu

EPS = 1e-5  # nn.BatchNorm2d default


def _fused_conv_bn_relu_kernel(lhs_ref, w_ref, red_ref, gamma_ref, beta_ref,
                               o_ref, *, inv_m):
    """Fused conv(3x3, pad 1) + BatchNorm(train stats) + ReLU, single grid step.

    lhs_ref  : (N*H, K*(W+2P)*Cin) bf16   im2row-over-kernel-rows LHS (lane = p*Cin+cin
                                          within each of the K row slabs)
    w_ref    : (K*(W+2P)*Cin, W*Cout) bf16 banded conv weight (all K taps stacked on the
                                          contraction axis)
    red_ref  : (W*Cout, W*Cout) f32       R[i,j] = 1 if i%Cout == j%Cout else 0
    gamma_ref: (1, W*Cout) f32            BN gamma tiled into the (w*Cout + c) lane layout
    beta_ref : (1, W*Cout) f32            BN beta, same layout
    o_ref    : (N*H, W*Cout) f32          final output (lane-dense, 128 lanes)
    """
    # ---- convolution: one MXU matmul, f32 accumulation.  Conv bias dropped on purpose
    # (cancelled by the BN mean subtraction below).
    y = jnp.dot(lhs_ref[...], w_ref[...],
                preferred_element_type=jnp.float32)            # (N*H, W*Cout) f32

    # ---- BN statistics: per-lane sums over all rows (XLU sublane reductions), then a
    # tiny matmul against R reduces over the W lane-groups of each channel AND
    # broadcasts the per-channel result back to every lane of that channel.
    row_sum = jnp.sum(y, axis=0, keepdims=True)                # (1, W*Cout)
    row_sumsq = jnp.sum(y * y, axis=0, keepdims=True)          # (1, W*Cout)
    sum_c = jnp.dot(row_sum, red_ref[...],
                    preferred_element_type=jnp.float32)        # (1, W*Cout), per-channel
    sumsq_c = jnp.dot(row_sumsq, red_ref[...],
                      preferred_element_type=jnp.float32)

    # ---- BN finalize (biased variance, training-mode statistics).
    mean = sum_c * inv_m
    var = jnp.maximum(sumsq_c * inv_m - mean * mean, 0.0)
    scale = gamma_ref[...] * jax.lax.rsqrt(var + EPS)
    shift = beta_ref[...] - mean * scale

    # ---- affine + ReLU, dense 128-lane store.
    o_ref[...] = jnp.maximum(y * scale + shift, 0.0)


def _build_banded_weight(w_hwio, W, Wp):
    """wband[ki, (w+kj)*Cin + cin, w*Cout + co] = w_hwio[ki, kj, cin, co] (else 0)."""
    K, _, Cin, Cout = w_hwio.shape
    p = jnp.arange(Wp)[:, None, None]
    wv = jnp.arange(W)[None, :, None]
    kj = jnp.arange(K)[None, None, :]
    sel = ((p - wv) == kj).astype(w_hwio.dtype)                # (Wp, W, K)
    wband = jnp.einsum('pwj,ijco->ipcwo', sel, w_hwio)         # (K, Wp, Cin, W, Cout)
    return wband.reshape(K, Wp * Cin, W * Cout)


def single_conv(x_nchw, weight_hwio, gamma, beta, kernelsize, bias=None):
    """Forward pass of SingleConv.  NCHW in / NCHW out (matching the PyTorch module).

    `bias` (Conv2d bias) is accepted for interface fidelity but is mathematically
    redundant before training-mode BatchNorm and therefore ignored.
    """
    del bias
    N, Cin, H, W = x_nchw.shape
    K = kernelsize
    P = 1  # the module hardcodes nn.Conv2d(..., padding=1)
    assert K == 2 * P + 1, "this kernel implements 'same' conv (kernelsize=3, padding=1)"
    Cout = weight_hwio.shape[-1]
    Hp, Wp = H + 2 * P, W + 2 * P
    WCin, WCout = Wp * Cin, W * Cout
    KWCin, NH = K * WCin, N * H

    # ---- XLA glue (single small prep fusion): NCHW->NHWC transpose, zero pad, flatten
    # (W, Cin) onto the lane axis, and concatenate the K shifted row-slabs so the kernel
    # needs no unaligned sublane slices.  Cast to bf16 for the MXU.
    x_nhwc = jnp.transpose(x_nchw, (0, 2, 3, 1))
    xp = jnp.pad(x_nhwc, ((0, 0), (P, P), (P, P), (0, 0))).astype(jnp.bfloat16)
    xp2 = xp.reshape(N, Hp, WCin)
    lhs = jnp.concatenate([xp2[:, ki:ki + H, :] for ki in range(K)], axis=-1)
    lhs = lhs.reshape(NH, KWCin)                               # (N*H, K*WCin)

    wband = _build_banded_weight(weight_hwio.astype(jnp.float32), W=W, Wp=Wp)
    wband = wband.reshape(KWCin, WCout).astype(jnp.bfloat16)   # (K*WCin, WCout)

    # Per-channel reduce/broadcast matrix and BN affine params in the lane layout.
    lane_c = jnp.arange(WCout) % Cout
    redmat = (lane_c[:, None] == lane_c[None, :]).astype(jnp.float32)   # (WCout, WCout)
    gamma_lane = jnp.tile(gamma.astype(jnp.float32), W)[None, :]        # (1, WCout)
    beta_lane = jnp.tile(beta.astype(jnp.float32), W)[None, :]

    # ---- one fused pallas_call (whole batch in one grid step; ~150 KB total VMEM).
    out_lane = pl.pallas_call(
        partial(_fused_conv_bn_relu_kernel, inv_m=1.0 / (N * H * W)),
        grid=(1,),
        in_specs=[
            pl.BlockSpec((NH, KWCin), lambda i: (0, 0)),
            pl.BlockSpec((KWCin, WCout), lambda i: (0, 0)),
            pl.BlockSpec((WCout, WCout), lambda i: (0, 0)),
            pl.BlockSpec((1, WCout), lambda i: (0, 0)),
            pl.BlockSpec((1, WCout), lambda i: (0, 0)),
        ],
        out_specs=pl.BlockSpec((NH, WCout), lambda i: (0, 0)),
        out_shape=jax.ShapeDtypeStruct((NH, WCout), jnp.float32),
        compiler_params=pltpu.CompilerParams(
            dimension_semantics=("arbitrary",),
        ),
    )(lhs, wband, redmat, gamma_lane, beta_lane)

    out_nhwc = out_lane.reshape(N, H, W, Cout)
    return jnp.transpose(out_nhwc, (0, 3, 1, 2))


def _reference(x_nchw, weight_hwio, bias, gamma, beta):
    """Pure-JAX f32 reference of the same forward pass (conv bias included)."""
    x = jnp.transpose(x_nchw, (0, 2, 3, 1)).astype(jnp.float32)
    y = jax.lax.conv_general_dilated(
        x, weight_hwio, window_strides=(1, 1), padding=((1, 1), (1, 1)),
        dimension_numbers=("NHWC", "HWIO", "NHWC"),
        preferred_element_type=jnp.float32) + bias.reshape(1, 1, 1, -1)
    mean = jnp.mean(y, axis=(0, 1, 2), keepdims=True)
    var = jnp.mean((y - mean) ** 2, axis=(0, 1, 2), keepdims=True)   # biased
    y = (y - mean) * jax.lax.rsqrt(var + EPS)
    y = y * gamma.reshape(1, 1, 1, -1) + beta.reshape(1, 1, 1, -1)
    y = jnp.maximum(y, 0.0)
    return jnp.transpose(y, (0, 3, 1, 2))


if __name__ == "__main__":
    # SingleConv(in_channels=4, out_channels=8, kernelsize=3) at small shapes.
    N, Cin, H, W = 2, 4, 16, 16
    Cout, K = 8, 3

    key = jax.random.PRNGKey(0)
    k = jax.random.split(key, 3)
    x = jax.random.normal(k[0], (N, Cin, H, W), jnp.float32)

    # Deterministic synthetic parameters (HWIO conv weights; BN affine at fresh init).
    w_hwio = 0.1 * jax.random.normal(k[1], (K, K, Cin, Cout), jnp.float32)
    bias = 0.1 * jax.random.normal(k[2], (Cout,), jnp.float32)   # cancelled by BN
    gamma = jnp.ones((Cout,), jnp.float32)
    beta = jnp.zeros((Cout,), jnp.float32)

    out = jax.block_until_ready(single_conv(x, w_hwio, gamma, beta, K, bias=bias))
    ref = jax.block_until_ready(_reference(x, w_hwio, bias, gamma, beta))

    assert out.shape == (N, Cout, H, W), out.shape
    max_err = float(jnp.max(jnp.abs(out - ref)))
    # Tolerance accounts for bf16 MXU operands (f32 accumulation) vs. the f32 reference.
    assert max_err < 2.5e-2, f"mismatch vs reference: {max_err}"
    print("KERNEL_OK")
</pallas_src>

<mosaic_0001>
module attributes {stable_mosaic.version = 11 : i64} {
  func.func @_fused_conv_bn_relu_kernel(%arg0: i32, %arg1: memref<32x216xbf16, #tpu.memory_space<vmem>>, %arg2: memref<216x128xbf16, #tpu.memory_space<vmem>>, %arg3: memref<128x128xf32, #tpu.memory_space<vmem>>, %arg4: memref<1x128xf32, #tpu.memory_space<vmem>>, %arg5: memref<1x128xf32, #tpu.memory_space<vmem>>, %arg6: memref<32x128xf32, #tpu.memory_space<vmem>>) attributes {dimension_semantics = [#tpu.dimension_semantics<arbitrary>], iteration_bounds = array<i64: 1>, scalar_prefetch = 0 : i64, scratch_operands = 0 : i64, tpu.core_type = #tpu.core_type<tc>, window_params = [{pipeline_mode = #tpu.pipeline_mode<synchronous>, transform_indices = @transform_0, window_bounds = array<i64: 32, 216>}, {pipeline_mode = #tpu.pipeline_mode<synchronous>, transform_indices = @transform_1, window_bounds = array<i64: 216, 128>}, {pipeline_mode = #tpu.pipeline_mode<synchronous>, transform_indices = @transform_2, window_bounds = array<i64: 128, 128>}, {pipeline_mode = #tpu.pipeline_mode<synchronous>, transform_indices = @transform_3, window_bounds = array<i64: 1, 128>}, {pipeline_mode = #tpu.pipeline_mode<synchronous>, transform_indices = @transform_4, window_bounds = array<i64: 1, 128>}, {pipeline_mode = #tpu.pipeline_mode<synchronous>, transform_indices = @transform_5, window_bounds = array<i64: 32, 128>}]} {
    %c0 = arith.constant 0 : index
    %c0_0 = arith.constant 0 : index
    %0 = vector.load %arg1[%c0, %c0_0] : memref<32x216xbf16, #tpu.memory_space<vmem>>, vector<32x216xbf16>
    %c0_1 = arith.constant 0 : index
    %c0_2 = arith.constant 0 : index
    %1 = vector.load %arg2[%c0_1, %c0_2] : memref<216x128xbf16, #tpu.memory_space<vmem>>, vector<216x128xbf16>
    %cst = arith.constant dense<0.000000e+00> : vector<32x128xf32>
    %2 = tpu.matmul %0, %1, %cst {dimension_numbers = #tpu.dot_dimension_numbers<[1], [0], [0], [1], [0, 0, 1, 1], [], []>} : vector<32x216xbf16>, vector<216x128xbf16>, vector<32x128xf32> -> vector<32x128xf32>
    %cst_3 = arith.constant dense<0.000000e+00> : vector<128xf32>
    %3 = vector.multi_reduction <add>, %2, %cst_3 [0] : vector<32x128xf32> to vector<128xf32>
    %4 = vector.shape_cast %3 : vector<128xf32> to vector<1x128xf32>
    %5 = arith.mulf %2, %2 : vector<32x128xf32>
    %cst_4 = arith.constant dense<0.000000e+00> : vector<128xf32>
    %6 = vector.multi_reduction <add>, %5, %cst_4 [0] : vector<32x128xf32> to vector<128xf32>
    %7 = vector.shape_cast %6 : vector<128xf32> to vector<1x128xf32>
    %c0_5 = arith.constant 0 : index
    %c0_6 = arith.constant 0 : index
    %8 = vector.load %arg3[%c0_5, %c0_6] : memref<128x128xf32, #tpu.memory_space<vmem>>, vector<128x128xf32>
    %cst_7 = arith.constant dense<0.000000e+00> : vector<1x128xf32>
    %9 = tpu.matmul %4, %8, %cst_7 {dimension_numbers = #tpu.dot_dimension_numbers<[1], [0], [0], [1], [0, 0, 1, 1], [], []>} : vector<1x128xf32>, vector<128x128xf32>, vector<1x128xf32> -> vector<1x128xf32>
    %c0_8 = arith.constant 0 : index
    %c0_9 = arith.constant 0 : index
    %10 = vector.load %arg3[%c0_8, %c0_9] : memref<128x128xf32, #tpu.memory_space<vmem>>, vector<128x128xf32>
    %cst_10 = arith.constant dense<0.000000e+00> : vector<1x128xf32>
    %11 = tpu.matmul %7, %10, %cst_10 {dimension_numbers = #tpu.dot_dimension_numbers<[1], [0], [0], [1], [0, 0, 1, 1], [], []>} : vector<1x128xf32>, vector<128x128xf32>, vector<1x128xf32> -> vector<1x128xf32>
    %cst_11 = arith.constant 0.001953125 : f32
    %12 = vector.broadcast %cst_11 : f32 to vector<1x128xf32>
    %13 = arith.mulf %9, %12 : vector<1x128xf32>
    %cst_12 = arith.constant 0.001953125 : f32
    %14 = vector.broadcast %cst_12 : f32 to vector<1x128xf32>
    %15 = arith.mulf %11, %14 : vector<1x128xf32>
    %16 = arith.mulf %13, %13 : vector<1x128xf32>
    %17 = arith.subf %15, %16 : vector<1x128xf32>
    %cst_13 = arith.constant 0.000000e+00 : f32
    %18 = vector.broadcast %cst_13 : f32 to vector<1x128xf32>
    %19 = arith.maximumf %17, %18 : vector<1x128xf32>
    %c0_14 = arith.constant 0 : index
    %c0_15 = arith.constant 0 : index
    %20 = vector.load %arg4[%c0_14, %c0_15] : memref<1x128xf32, #tpu.memory_space<vmem>>, vector<1x128xf32>
    %cst_16 = arith.constant 9.99999974E-6 : f32
    %21 = vector.broadcast %cst_16 : f32 to vector<1x128xf32>
    %22 = arith.addf %19, %21 : vector<1x128xf32>
    %23 = math.rsqrt %22 : vector<1x128xf32>
    %24 = arith.mulf %20, %23 : vector<1x128xf32>
    %c0_17 = arith.constant 0 : index
    %c0_18 = arith.constant 0 : index
    %25 = vector.load %arg5[%c0_17, %c0_18] : memref<1x128xf32, #tpu.memory_space<vmem>>, vector<1x128xf32>
    %26 = arith.mulf %13, %24 : vector<1x128xf32>
    %27 = arith.subf %25, %26 : vector<1x128xf32>
    %28 = vector.broadcast %24 : vector<1x128xf32> to vector<32x128xf32>
    %29 = arith.mulf %2, %28 : vector<32x128xf32>
    %30 = vector.broadcast %27 : vector<1x128xf32> to vector<32x128xf32>
    %31 = arith.addf %29, %30 : vector<32x128xf32>
    %cst_19 = arith.constant 0.000000e+00 : f32
    %32 = vector.broadcast %cst_19 : f32 to vector<32x128xf32>
    %33 = arith.maximumf %31, %32 : vector<32x128xf32>
    %c0_20 = arith.constant 0 : index
    %c0_21 = arith.constant 0 : index
    %34 = vector.load %arg6[%c0_20, %c0_21] : memref<32x128xf32, #tpu.memory_space<vmem>>, vector<32x128xf32>
    tpu.vector_store %arg6[%c0_20, %c0_21], %33 {strides = array<i32>} : memref<32x128xf32, #tpu.memory_space<vmem>>, vector<32x128xf32>,
    return
  }
  func.func @transform_0(%arg0: i32) -> (i32, i32) {
    %c0_i32 = arith.constant 0 : i32
    %c0_i32_0 = arith.constant 0 : i32
    %c0_i32_1 = arith.constant 0 : i32
    return %c0_i32, %c0_i32_0 : i32, i32
  }
  func.func @transform_1(%arg0: i32) -> (i32, i32) {
    %c0_i32 = arith.constant 0 : i32
    %c0_i32_0 = arith.constant 0 : i32
    %c0_i32_1 = arith.constant 0 : i32
    return %c0_i32, %c0_i32_0 : i32, i32
  }
  func.func @transform_2(%arg0: i32) -> (i32, i32) {
    %c0_i32 = arith.constant 0 : i32
    %c0_i32_0 = arith.constant 0 : i32
    %c0_i32_1 = arith.constant 0 : i32
    return %c0_i32, %c0_i32_0 : i32, i32
  }
  func.func @transform_3(%arg0: i32) -> (i32, i32) {
    %c0_i32 = arith.constant 0 : i32
    %c0_i32_0 = arith.constant 0 : i32
    %c0_i32_1 = arith.constant 0 : i32
    return %c0_i32, %c0_i32_0 : i32, i32
  }
  func.func @transform_4(%arg0: i32) -> (i32, i32) {
    %c0_i32 = arith.constant 0 : i32
    %c0_i32_0 = arith.constant 0 : i32
    %c0_i32_1 = arith.constant 0 : i32
    return %c0_i32, %c0_i32_0 : i32, i32
  }
  func.func @transform_5(%arg0: i32) -> (i32, i32) {
    %c0_i32 = arith.constant 0 : i32
    %c0_i32_0 = arith.constant 0 : i32
    %c0_i32_1 = arith.constant 0 : i32
    return %c0_i32, %c0_i32_0 : i32, i32
  }
}

</mosaic_0001>

<bundles_post_ra>
// kernel: tpu_custom_call.1
= control target key start
LH: loop header
LB: loop body
LE: loop exit
PB: predicated region body
PF: predicated region fallthrough
CT: control target
= control target key end

     0   :  { %10 = vsyncpa [#allocation3], 0  ;;  %s653_s0 = inlined_call_operand.hbm [shape: bf16[32,216], index: 0, kind: input, shape index: {}]   ;;  %s654_s1 = inlined_call_operand.hbm [shape: bf16[216,128], index: 1, kind: input, shape index: {}]   ;;  %s655_s2 = inlined_call_operand.hbm [shape: f32[128,128], index: 2, kind: input, shape index: {}]   ;;  %s656_s3 = inlined_call_operand.vmem [shape: f32[1,128], index: 3, kind: input, shape index: {}]   ;;  %s657_s4 = inlined_call_operand.vmem [shape: f32[1,128], index: 4, kind: input, shape index: {}]   ;;  %s658_s5 = inlined_call_operand.hbm [shape: f32[32,128], index: 5, kind: output, shape index: {}]  }
   0x1   :  { %11 = vsyncpa [#allocation6], 0  ;;  %s30_s20 = sshll.u32 %s654_s1, 4  ;;  %s31_s20 = int_to_ptr.hbm [resolvable:$true] %s30_s20 }
   0x2   :  { %12 = vsyncpa [#allocation4], 0  ;;  %s588_s21 = smov [#allocation5]   ;;  %s17_s25 = sshll.u32 %s653_s0, 4  ;;  %s18_s25 = int_to_ptr.hbm [resolvable:$true] %s17_s25 }
   0x3   :  { %s32_s22 = sshll.u32 %s588_s21, 4  ;;  %s589_s26 = smov 64   ;;  %s33_s22 = int_to_ptr.vmem [resolvable:$true] %s32_s22 }
   0x4   :  { %s590_s27 = smov 4   ;;  %s591_s28 = smov [#allocation2]  }
   0x5   :  { %38 = dma.hbm_to_vmem [thread:$0]  %s31_s20, 1728, %s33_s22, [#allocation6], %s589_s26, %s589_s26, %s590_s27  }
   0x6   :  { %s19_s29 = sshll.u32 %s591_s28, 4  ;;  %s592_s30 = smov 128   ;;  %s20_s29 = int_to_ptr.vmem [resolvable:$true] %s19_s29 }
   0x7   :  { %s593_s6 = smov 8   ;;  %s43_s8 = sshll.u32 %s655_s2, 4  ;;  %s44_s8 = int_to_ptr.hbm [resolvable:$true] %s43_s8 }
   0x8   :  { %25 = dma.hbm_to_vmem [thread:$0]  %s18_s25, 512, %s20_s29, [#allocation3], %s592_s30, %s592_s30, %s593_s6  }
   0x9   :  { %s594_s9 = smov [#allocation7]  }
   0xa   :  { %s45_s0 = sshll.u32 %s594_s9, 4  ;;  %s46_s0 = int_to_ptr.vmem [resolvable:$true] %s45_s0 }
   0xb   :  { %51 = dma.hbm_to_vmem [thread:$0]  %s44_s8, 2048, %s46_s0, [#allocation6], %s592_s30, %s592_s30, %s593_s6  }
   0xc   :  { %582 = dma.done.wait [#allocation3], 512  }
   0xd   :  { %583 = vsyncadd [#allocation3], 4294966784 }
   0xe   :  { %584 = dma.done.wait [#allocation6], 3776  }
   0xf   :  { %585 = vsyncadd [#allocation6], 4294963520  ;;  %v470_v0 = vld [vmem:[#allocation5 + $0x38] sm:$0xff]  ;;  %v99_v1 = vld [vmem:[#allocation5 + $0x68] sm:$0xf]  ;;  %vm206_vm0 = vcmask 1043456  }
  0x10   :  { %v171_v2 = vunpack.c.l.b16 %v99_v1  ;;  %210 = vmatpush.bf16.msra.mxu0 %v470_v0  ;;  %v469_v3 = vld [vmem:[#allocation5 + $0x30] sm:$0xff]  ;;  %v475_v6 = vld [vmem:[#allocation5 + $0x60] sm:$0xff]  ;;  %v468_v7 = vld [vmem:[#allocation5 + $0x28] sm:$0xff]  ;;  %vm199_vm1 = vcmask 719872  }
  0x11   :  { %v474_v8 = vld [vmem:[#allocation5 + $0x58] sm:$0xff]  ;;  %v467_v9 = vld [vmem:[#allocation5 + $0x20] sm:$0xff]  ;;  %v473_v10 = vld [vmem:[#allocation5 + $0x50] sm:$0xff] }
  0x12   :  { %v185_v4 = vpack.c.b16 %v171_v2, %v171_v2  ;;  %v466_v11 = vld [vmem:[#allocation5 + $0x18] sm:$0xff]  ;;  %v472_v12 = vld [vmem:[#allocation5 + $0x48] sm:$0xff]  ;;  %v465_v13 = vld [vmem:[#allocation5 + $0x10] sm:$0xff] }
  0x13   :  { %v471_v14 = vld [vmem:[#allocation5 + $0x40] sm:$0xff]  ;;  %v464_v15 = vld [vmem:[#allocation5 + $0x8] sm:$0xff]  ;;  %v461_v23 = vld [vmem:[#allocation2 + $0x14] sm:$0xf] }
  0x14   :  { %v208_v5 = vsel %vm206_vm0, %v185_v4, 0  ;;  %211 = vmatpush.bf16.msra.mxu0 %v469_v3  ;;  %v459_v16 = vld [vmem:[#allocation2 + $0x4] sm:$0xf]  ;;  %v393_v17 = vld [vmem:[#allocation2 + $0x8] sm:$0xf0]  ;;  %v284_v30 = vld [vmem:[#allocation7 + $0x70] sm:$0xff] }
  0x15   :  { %231 = vmatpush.bf16.msra.mxu1 %v208_v5  ;;  %v396_v18 = vor.u32 %v459_v16, %v393_v17  ;;  %v463_v19 = vld [vmem:[#allocation5] sm:$0xff]  ;;  %v460_v21 = vld [vmem:[#allocation2 + $0x4] sm:$0xf0]  ;;  %v401_v24 = vld [vmem:[#allocation2 + $0x18] sm:$0xf0] }
  0x16   :  { %v391_v20 = vld [vmem:[#allocation2] sm:$0xf]  ;;  %v404_v25 = vor.u32 %v461_v23, %v401_v24  ;;  %v399_v26 = vld [vmem:[#allocation2 + $0x10] sm:$0xf]  ;;  %v462_v27 = vld [vmem:[#allocation2 + $0x14] sm:$0xf0] }
  0x17   :  { %v392_v22 = vor.u32 %v460_v21, %v391_v20  ;;  %v400_v28 = vor.u32 %v462_v27, %v399_v26  ;;  %v285_v29 = vld [vmem:[#allocation7 + $0x78] sm:$0xff]  ;;  %v283_v31 = vld [vmem:[#allocation7 + $0x68] sm:$0xff]  ;;  %v282_v32 = vld [vmem:[#allocation7 + $0x60] sm:$0xff] }
  0x18   :  { %212 = vmatpush.bf16.msra.mxu0 %v468_v7  ;;  %286 = vmatpush.msra.mxu2 %v285_v29  ;;  %v281_v33 = vld [vmem:[#allocation7 + $0x58] sm:$0xff]  ;;  %v280_v34 = vld [vmem:[#allocation7 + $0x50] sm:$0xff]  ;;  %v279_v35 = vld [vmem:[#allocation7 + $0x48] sm:$0xff] }
  0x19   :  { %232 = vmatpush.bf16.msra.mxu1 %v475_v6  ;;  %306 = vmatpush.msra.mxu3 %v285_v29  ;;  %v278_v36 = vld [vmem:[#allocation7 + $0x40] sm:$0xff]  ;;  %v277_v37 = vld [vmem:[#allocation7 + $0x38] sm:$0xff]  ;;  %v276_v38 = vld [vmem:[#allocation7 + $0x30] sm:$0xff] }
  0x1a   :  { %287 = vmatpush.msra.mxu2 %v284_v30  ;;  %v275_v40 = vld [vmem:[#allocation7 + $0x28] sm:$0xff]  ;;  %v274_v41 = vld [vmem:[#allocation7 + $0x20] sm:$0xff]  ;;  %v273_v42 = vld [vmem:[#allocation7 + $0x18] sm:$0xff] }
  0x1b   :  { %307 = vmatpush.msra.mxu3 %v284_v30  ;;  %v272_v44 = vld [vmem:[#allocation7 + $0x10] sm:$0xff]  ;;  %v271_v45 = vld [vmem:[#allocation7 + $0x8] sm:$0xff]  ;;  %v270_v47 = vld [vmem:[#allocation7] sm:$0xff] }
  0x1c   :  { %213 = vmatpush.bf16.msra.mxu0 %v467_v9  ;;  %288 = vmatpush.msra.mxu2 %v283_v31 }
  0x1d   :  { %233 = vmatpush.bf16.msra.mxu1 %v474_v8  ;;  %308 = vmatpush.msra.mxu3 %v283_v31 }
  0x1e   :  { %289 = vmatpush.msra.mxu2 %v282_v32 }
  0x1f   :  { %309 = vmatpush.msra.mxu3 %v282_v32  ;;  %v344_v32 = vld [vmem:[%s657_s4] sm:$0x1]  ;;  %s375_s4 = sshll.u32 %s658_s5, 4  ;;  %s376_s4 = int_to_ptr.hbm [resolvable:$true] %s375_s4 }
  0x20   :  { %214 = vmatpush.bf16.msra.mxu0 %v466_v11  ;;  %290 = vmatpush.msra.mxu2 %v281_v33 }
  0x21   :  { %234 = vmatpush.bf16.msra.mxu1 %v473_v10  ;;  %310 = vmatpush.msra.mxu3 %v281_v33 }
  0x22   :  { %291 = vmatpush.msra.mxu2 %v280_v34 }
  0x23   :  { %311 = vmatpush.msra.mxu3 %v280_v34 }
  0x24   :  { %215 = vmatpush.bf16.msra.mxu0 %v465_v13  ;;  %292 = vmatpush.msra.mxu2 %v279_v35 }
  0x25   :  { %235 = vmatpush.bf16.msra.mxu1 %v472_v12  ;;  %312 = vmatpush.msra.mxu3 %v279_v35 }
  0x26   :  { %293 = vmatpush.msra.mxu2 %v278_v36 }
  0x27   :  { %313 = vmatpush.msra.mxu3 %v278_v36 }
  0x28   :  { %216 = vmatpush.bf16.msra.mxu0 %v464_v15  ;;  %294 = vmatpush.msra.mxu2 %v277_v37 }
  0x29   :  { %236 = vmatpush.bf16.msra.mxu1 %v471_v14  ;;  %314 = vmatpush.msra.mxu3 %v277_v37 }
  0x2a   :  { %295 = vmatpush.msra.mxu2 %v276_v38 }
  0x2b   :  { %315 = vmatpush.msra.mxu3 %v276_v38 }
  0x2c   :  { %457 = vmatmul.msk.bf16.vlgmr.msra.gmra.mxu1 %vm199_vm1, %v396_v18  ;;  %217 = vmatpush.bf16.msra.mxu0 %v463_v19 }
  0x2d   :  { %296 = vmatpush.msra.mxu2 %v275_v40  ;;  %316 = vmatpush.msra.mxu3 %v275_v40 }
  0x2f   :  { %218 = vmatmul.bf16.vlgmr.msra.gmra.mxu0 %v392_v22  ;;  %297 = vmatpush.msra.mxu2 %v274_v41 }
  0x30   :  { %317 = vmatpush.msra.mxu3 %v274_v41 }
  0x31   :  { %298 = vmatpush.msra.mxu2 %v273_v42 }
  0x32   :  { %318 = vmatpush.msra.mxu3 %v273_v42 }
  0x33   :  { %299 = vmatpush.msra.mxu2 %v272_v44 }
  0x34   :  { %319 = vmatpush.msra.mxu3 %v272_v44 }
  0x35   :  { %300 = vmatpush.msra.mxu2 %v271_v45 }
  0x36   :  { %320 = vmatpush.msra.mxu3 %v271_v45 }
  0x37   :  { %301 = vmatpush.msra.mxu2 %v270_v47 }
  0x38   :  { %321 = vmatpush.msra.mxu3 %v270_v47 }
  0x3c   :  { %458 = vmatmul.msk.bf16.gmra.mxu1 %vm199_vm1, %v404_v25 }
  0x3f   :  { %223 = vmatmul.bf16.gmra.mxu0 %v400_v28  ;;  %v331_v28 = vld [vmem:[%s656_s3] sm:$0x1]  ;;  %s595_s3 = smov [#allocation8]  }
  0x40   :  { %s373_s13 = sshll.u32 %s595_s3, 4  ;;  %s374_s13 = int_to_ptr.vmem [resolvable:$true] %s373_s13 }
  0xa9   :  { %v238_v39 = vpop.f32.mrf.mxu1 }
  0xac   :  { %v219_v43 = vpop.f32.mrf.mxu0 }
  0xad   :  { %v239_v52 = vadd.f32 %v238_v39, %v219_v43 }
  0xaf   :  { %v257_v55 = vmul.f32 %v239_v52, %v239_v52 }
  0xb1   :  { %v240_v46 = vpop.f32.mrf.mxu1 }
  0xb4   :  { %v221_v48 = vpop.f32.mrf.mxu0 }
  0xb5   :  { %v241_v51 = vadd.f32 %v240_v46, %v221_v48 }
  0xb7   :  { %v258_v54 = vmul.f32 %v241_v51, %v241_v51  ;;  %v248_v56 = vadd.f32 %v241_v51, %v239_v52 }
  0xb9   :  { %v243_v49 = vpop.f32.mrf.mxu1  ;;  %v261_v60 = vadd.f32 %v258_v54, %v257_v55 }
  0xbc   :  { %v224_v50 = vpop.f32.mrf.mxu0 }
  0xbd   :  { %v244_v53 = vadd.f32 %v243_v49, %v224_v50 }
  0xbf   :  { %v259_v57 = vmul.f32 %v244_v53, %v244_v53  ;;  %v249_v61 = vadd.f32 %v248_v56, %v244_v53 }
  0xc1   :  { %v245_v58 = vpop.f32.mrf.mxu1  ;;  %v262_v63 = vadd.f32 %v261_v60, %v259_v57 }
  0xc4   :  { %v226_v59 = vpop.f32.mrf.mxu0 }
  0xc5   :  { %v246_v62 = vadd.f32 %v245_v58, %v226_v59 }
  0xc7   :  { %v250_v0 = vadd.f32 %v249_v61, %v246_v62  ;;  %v260_v1 = vmul.f32 %v246_v62, %v246_v62 }
  0xc9   :  { %v251_v2 = vrot.slane %v250_v0, 4  ;;  %v263_v3 = vadd.f32 %v262_v63, %v260_v1 }
  0xcb   :  { %v252_v4 = vadd.f32 %v251_v2, %v250_v0  ;;  %v264_v5 = vrot.slane %v263_v3, 4 }
  0xcd   :  { %v253_v6 = vrot.slane %v252_v4, 2  ;;  %v265_v7 = vadd.f32 %v264_v5, %v263_v3 }
  0xcf   :  { %v254_v8 = vadd.f32 %v253_v6, %v252_v4  ;;  %v266_v9 = vrot.slane %v265_v7, 2 }
  0xd1   :  { %v255_v10 = vrot.slane %v254_v8, 1  ;;  %v267_v11 = vadd.f32 %v266_v9, %v265_v7 }
  0xd3   :  { %v256_v12 = vadd.f32 %v255_v10, %v254_v8  ;;  %v268_v13 = vrot.slane %v267_v11, 1 }
  0xd5   :  { %302 = vmatmul.f32.vlgmr.msra.gmra.mxu2 %v256_v12  ;;  %v269_v14 = vadd.f32 %v268_v13, %v267_v11 }
  0xd7   :  { %322 = vmatmul.f32.vlgmr.msra.gmra.mxu3 %v269_v14 }
 0x158   :  { %v303_v15 = vpop.f32.mrf.mxu2 }
 0x159   :  { %v326_v16 = vmul.f32 0.001953125, %v303_v15 }
 0x15a   :  { %v323_v17 = vpop.f32.mrf.mxu3 }
 0x15b   :  { %v328_v18 = vmul.f32 %v326_v16, %v326_v16  ;;  %v327_v19 = vmul.f32 0.001953125, %v323_v17 }
 0x15d   :  { %v329_v20 = vsub.f32 %v327_v19, %v328_v18 }
 0x15f   :  { %v330_v21 = vmax.f32 %v329_v20, 0.0 }
 0x161   :  { %v332_v22 = vadd.f32 1e-05, %v330_v21 }
 0x163   :  { %484 = vrsqrt.f32 %v332_v22  ;;  %vm339_vm3 = vweird.f32 %v332_v22 }
 0x169   :  { %v485_v23 = vpop.eup %484 }
 0x16a   :  { %v334_v24 = vmul.f32 %v485_v23, %v332_v22  ;;  %vm340_vm2 = vweird.f32 %v485_v23 }
 0x16b   :  { %vm341_vm4 = vmor %vm339_vm3, %vm340_vm2 }
 0x16c   :  { %v335_v25 = vmul.f32 %v485_v23, %v334_v24 }
 0x16e   :  { %v336_v26 = vmul.f32 0.5, %v335_v25 }
 0x170   :  { %v337_v27 = vsub.f32 1.5, %v336_v26 }
 0x172   :  { %v338_v29 = vmul.f32 %v485_v23, %v337_v27 }
 0x174   :  { %v342_v30 = vsel %vm341_vm4, %v485_v23, %v338_v29 }
 0x175   :  { %v343_v31 = vmul.f32 %v342_v30, %v331_v28 }
 0x177   :  { %v345_v33 = vmul.f32 %v343_v31, %v326_v16  ;;  %v348_v34 = vperm.slane %v343_v31, 0 }
 0x179   :  { %v346_v35 = vsub.f32 %v344_v32, %v345_v33  ;;  %v350_v36 = vmul.f32 %v348_v34, %v239_v52  ;;  %v351_v38 = vmul.f32 %v348_v34, %v241_v51  ;;  %v352_v39 = vmul.f32 %v348_v34, %v244_v53 }
 0x17a   :  { %v353_v40 = vmul.f32 %v348_v34, %v246_v62 }
 0x17b   :  { %v355_v37 = vperm.slane %v346_v35, 0 }
 0x17d   :  { %v357_v41 = vadd.f32 %v355_v37, %v350_v36  ;;  %v358_v42 = vadd.f32 %v355_v37, %v351_v38  ;;  %v359_v43 = vadd.f32 %v355_v37, %v352_v39  ;;  %v360_v44 = vadd.f32 %v355_v37, %v353_v40 }
 0x17f   :  { %v361_v45 = vmax.f32 %v357_v41, 0.0  ;;  %v362_v46 = vmax.f32 %v358_v42, 0.0  ;;  %v363_v47 = vmax.f32 %v359_v43, 0.0  ;;  %v364_v48 = vmax.f32 %v360_v44, 0.0 }
 0x181   :  { %365 = vst [vmem:[#allocation8] sm:$0xff] %v361_v45 }
 0x182   :  { %366 = vst [vmem:[#allocation8 + $0x8] sm:$0xff] %v362_v46 }
 0x183   :  { %367 = vst [vmem:[#allocation8 + $0x10] sm:$0xff] %v363_v47 }
 0x184   :  { %368 = vst [vmem:[#allocation8 + $0x18] sm:$0xff] %v364_v48 }
 0x185   :  { %381 = dma.vmem_to_hbm [thread:$0]  %s374_s13, 512, %s376_s4, [#allocation4], %s592_s30, %s592_s30, %s593_s6  }
 0x186   :  { %586 = dma.done.wait [#allocation4], 512  }
 0x187   :  { %587 = vsyncadd [#allocation4], 4294966784 }
 0x188   :  { %386 = vsyncpa [#allocation3], 1 }
 0x189   :  { %387 = vsyncpa [#allocation6], 1 }
 0x18a   :  { %388 = vsyncpa [#allocation4], 1 }

</bundles_post_ra>
